<compile_context>
chip_gen: v7x
topology: tpu7x:2x2x1
jax: 0.10.0
libtpu: 0.0.40
codegen_flags: <defaults>
</compile_context>

<pallas_src>
import jax
import jax.numpy as jnp
from jax.experimental import pallas as pl
from jax.experimental.pallas import tpu as pltpu


def _round_up(v, m):
    return (v + m - 1) // m * m


# ----------------------------------------------------------------------------
# Pallas kernel: Linear + bias + ReLU, single K/N block, grid over M only
# ----------------------------------------------------------------------------
def _linear_relu_kernel(x_ref, w_ref, b_ref, o_ref):
    # x_ref: (tm, Kp) f32   w_ref: (Kp, Np) bf16 (VMEM-resident across grid)
    # b_ref: (1, Np)  f32   o_ref: (tm, Np) f32
    x_bf16 = x_ref[...].astype(jnp.bfloat16)  # in-kernel cast: no wrapper HBM pass
    y = jnp.dot(x_bf16, w_ref[...], preferred_element_type=jnp.float32)
    o_ref[...] = jnp.maximum(y + b_ref[...], 0.0).astype(o_ref.dtype)


def linear_relu(x, w_bf16, b_f32, *, tm_cap=512):
    """ReLU(x @ w + b) as a Pallas TPU kernel.

    x: (B, D_in) f32, w_bf16: (D_in, D_emb) bf16, b_f32: (1, D_emb) f32.
    The full K (D_in) and N (D_emb) extents live in one VMEM block (resident
    weight); only the batch/M axis is gridded, in tiles of at most `tm_cap`
    rows.  Padding is applied only when a dimension is not already aligned.
    """
    B, D_in = x.shape
    D_in2, D_emb = w_bf16.shape
    assert D_in == D_in2 and b_f32.shape == (1, D_emb)

    # TODO(synk): for very large D_in/D_emb (weight block > VMEM) reintroduce a
    # K/N tiling with an f32 accumulator (P3); unnecessary at speaker-head sizes.
    Kp = _round_up(D_in, 128)
    Np = _round_up(D_emb, 128)
    tm = min(tm_cap, _round_up(B, 8))
    Mp = _round_up(B, tm)

    # Static (trace-time) checks: pad only when actually needed.
    x_p = x if (Mp, Kp) == (B, D_in) else (
        jnp.zeros((Mp, Kp), x.dtype).at[:B, :D_in].set(x))
    w_p = w_bf16 if (Kp, Np) == (D_in, D_emb) else (
        jnp.zeros((Kp, Np), jnp.bfloat16).at[:D_in, :D_emb].set(w_bf16))
    b_p = b_f32 if Np == D_emb else (
        jnp.zeros((1, Np), jnp.float32).at[:, :D_emb].set(b_f32))

    grid = (Mp // tm,)

    # Resident W/bias: read once; x and out streamed once.
    cost = pl.CostEstimate(
        flops=2 * Mp * Kp * Np,
        transcendentals=0,
        bytes_accessed=(x_p.size * x_p.dtype.itemsize
                        + w_p.size * 2
                        + b_p.size * 4
                        + Mp * Np * 4),
    )

    out_p = pl.pallas_call(
        _linear_relu_kernel,
        out_shape=jax.ShapeDtypeStruct((Mp, Np), jnp.float32),
        grid=grid,
        in_specs=[
            pl.BlockSpec((tm, Kp), lambda i: (i, 0)),   # x tiles stream over M
            pl.BlockSpec((Kp, Np), lambda i: (0, 0)),   # W resident in VMEM
            pl.BlockSpec((1, Np), lambda i: (0, 0)),    # bias resident
        ],
        out_specs=pl.BlockSpec((tm, Np), lambda i: (i, 0)),
        compiler_params=pltpu.CompilerParams(
            dimension_semantics=("parallel",),          # megacore-shard M at large B
            vmem_limit_bytes=48 * 1024 * 1024,          # safe on v7x (64 MiB VMEM)
        ),
        cost_estimate=cost,
    )(x_p, w_p, b_p)

    if (Mp, Np) == (B, D_emb):
        return out_p
    return out_p[:B, :D_emb]


# ----------------------------------------------------------------------------
# Synthetic inner module (stands in for the SpeakerNet model being wrapped)
# ----------------------------------------------------------------------------
class InnerSpeakerModel:
    """Deterministic Linear(D_in, D_emb) + ReLU embedding head."""

    def __init__(self, d_in, d_emb, key):
        k_w, k_b = jax.random.split(key)
        bound = 1.0 / (d_in ** 0.5)
        w = jax.random.uniform(k_w, (d_in, d_emb), dtype=jnp.float32,
                               minval=-bound, maxval=bound)
        b = jax.random.uniform(k_b, (d_emb,), dtype=jnp.float32,
                               minval=-bound, maxval=bound)
        # Cast once at construction (not per forward): bf16 weight for the MXU,
        # f32 bias shaped (1, D_emb) for lane-dense broadcast in the kernel.
        self.weight_bf16 = w.astype(jnp.bfloat16)
        self.bias_f32 = b.reshape(1, d_emb).astype(jnp.float32)

    def __call__(self, x, label=None):
        # `label` is accepted (SpeakerNet signature) but unused by this
        # forward-only head.
        # TODO(synk): a real SpeakerNet routes `label` into its loss head here.
        return linear_relu(x, self.weight_bf16, self.bias_f32)


# ----------------------------------------------------------------------------
# WrappedModel: exact semantics of the PyTorch wrapper
# ----------------------------------------------------------------------------
class WrappedModel:
    def __init__(self, model):
        self.module = model

    def __call__(self, x, label=None):
        return self.module(x, label)


if __name__ == "__main__":
    key = jax.random.PRNGKey(0)
    k_x, k_params = jax.random.split(key)

    # Speaker-embedding head sizes; 128-aligned so the no-pad fast path and a
    # single grid step (tm = Mp = 256) are exercised.
    B, D_in, D_emb = 256, 512, 256
    x = jax.random.normal(k_x, (B, D_in), dtype=jnp.float32)

    inner = InnerSpeakerModel(D_in, D_emb, k_params)
    model = WrappedModel(inner)

    out = model(x, label=None)
    out = jax.block_until_ready(out)
    assert out.shape == (B, D_emb)
    assert out.dtype == jnp.float32

    # Reference in plain JAX using the same bf16-input / f32-accumulate recipe.
    ref = jnp.maximum(
        jnp.dot(
            x.astype(jnp.bfloat16),
            inner.weight_bf16,
            preferred_element_type=jnp.float32,
        )
        + inner.bias_f32,
        0.0,
    )
    assert jnp.allclose(out, ref, atol=1e-2, rtol=1e-2), float(
        jnp.max(jnp.abs(out - ref))
    )

    print("KERNEL_OK")
</pallas_src>

<mosaic_0001>
module attributes {stable_mosaic.version = 11 : i64} {
  func.func @_linear_relu_kernel(%arg0: i32, %arg1: memref<256x512xf32, #tpu.memory_space<vmem>>, %arg2: memref<512x256xbf16, #tpu.memory_space<vmem>>, %arg3: memref<1x256xf32, #tpu.memory_space<vmem>>, %arg4: memref<256x256xf32, #tpu.memory_space<vmem>>) attributes {dimension_semantics = [#tpu.dimension_semantics<parallel>], iteration_bounds = array<i64: 1>, scalar_prefetch = 0 : i64, scratch_operands = 0 : i64, tpu.core_type = #tpu.core_type<tc>, window_params = [{transform_indices = @transform_0, window_bounds = array<i64: 256, 512>}, {pipeline_mode = #tpu.pipeline_mode<synchronous>, transform_indices = @transform_1, window_bounds = array<i64: 512, 256>}, {pipeline_mode = #tpu.pipeline_mode<synchronous>, transform_indices = @transform_2, window_bounds = array<i64: 1, 256>}, {transform_indices = @transform_3, window_bounds = array<i64: 256, 256>}]} {
    %c0 = arith.constant 0 : index
    %c0_0 = arith.constant 0 : index
    %0 = vector.load %arg1[%c0, %c0_0] : memref<256x512xf32, #tpu.memory_space<vmem>>, vector<256x512xf32>
    %1 = arith.truncf %0 : vector<256x512xf32> to vector<256x512xbf16>
    %c0_1 = arith.constant 0 : index
    %c0_2 = arith.constant 0 : index
    %2 = vector.load %arg2[%c0_1, %c0_2] : memref<512x256xbf16, #tpu.memory_space<vmem>>, vector<512x256xbf16>
    %cst = arith.constant dense<0.000000e+00> : vector<256x256xf32>
    %3 = tpu.matmul %1, %2, %cst {dimension_numbers = #tpu.dot_dimension_numbers<[1], [0], [0], [1], [0, 0, 1, 1], [], []>} : vector<256x512xbf16>, vector<512x256xbf16>, vector<256x256xf32> -> vector<256x256xf32>
    %c0_3 = arith.constant 0 : index
    %c0_4 = arith.constant 0 : index
    %4 = vector.load %arg3[%c0_3, %c0_4] : memref<1x256xf32, #tpu.memory_space<vmem>>, vector<1x256xf32>
    %5 = vector.broadcast %4 : vector<1x256xf32> to vector<256x256xf32>
    %6 = arith.addf %3, %5 : vector<256x256xf32>
    %cst_5 = arith.constant 0.000000e+00 : f32
    %7 = vector.broadcast %cst_5 : f32 to vector<256x256xf32>
    %8 = arith.maximumf %6, %7 : vector<256x256xf32>
    %c0_6 = arith.constant 0 : index
    %c0_7 = arith.constant 0 : index
    %9 = vector.load %arg4[%c0_6, %c0_7] : memref<256x256xf32, #tpu.memory_space<vmem>>, vector<256x256xf32>
    tpu.vector_store %arg4[%c0_6, %c0_7], %8 {strides = array<i32>} : memref<256x256xf32, #tpu.memory_space<vmem>>, vector<256x256xf32>,
    return
  }
  func.func @transform_0(%arg0: i32) -> (i32, i32) {
    %c0_i32 = arith.constant 0 : i32
    %c0_i32_0 = arith.constant 0 : i32
    return %arg0, %c0_i32 : i32, i32
  }
  func.func @transform_1(%arg0: i32) -> (i32, i32) {
    %c0_i32 = arith.constant 0 : i32
    %c0_i32_0 = arith.constant 0 : i32
    %c0_i32_1 = arith.constant 0 : i32
    return %c0_i32, %c0_i32_0 : i32, i32
  }
  func.func @transform_2(%arg0: i32) -> (i32, i32) {
    %c0_i32 = arith.constant 0 : i32
    %c0_i32_0 = arith.constant 0 : i32
    %c0_i32_1 = arith.constant 0 : i32
    return %c0_i32, %c0_i32_0 : i32, i32
  }
  func.func @transform_3(%arg0: i32) -> (i32, i32) {
    %c0_i32 = arith.constant 0 : i32
    %c0_i32_0 = arith.constant 0 : i32
    return %arg0, %c0_i32 : i32, i32
  }
}

</mosaic_0001>

<bundles_post_ra>
// kernel: tpu_custom_call.1
= control target key start
LH: loop header
LB: loop body
LE: loop exit
PB: predicated region body
PF: predicated region fallthrough
CT: control target
= control target key end

     0   :  { %8 = vsyncpa [#allocation3], 0  ;;  %s1668_s0 = inlined_call_operand.hbm [shape: f32[256,512], index: 0, kind: input, shape index: {}]   ;;  %s1669_s1 = inlined_call_operand.hbm [shape: bf16[512,256], index: 1, kind: input, shape index: {}]   ;;  %s1670_s2 = inlined_call_operand.vmem [shape: f32[1,256], index: 2, kind: input, shape index: {}]   ;;  %s1671_s3 = inlined_call_operand.hbm [shape: f32[256,256], index: 3, kind: output, shape index: {}]  }
   0x1   :  { %9 = vsyncpa [#allocation6], 0 }
   0x2   :  { %10 = vsyncpa [#allocation4], 0  ;;  %s1532_s12 = smov [#allocation2]   ;;  %s1460_s16 = scalar_lea.hbm %s1668_s0, 16384 }
   0x3   :  { %s16_s13 = sshll.u32 %s1532_s12, 4  ;;  %p1461_p0 = scmp.ne.s32.totalorder %s1668_s0, %s1460_s16  ;;  %s17_s13 = int_to_ptr.vmem [resolvable:$true] %s16_s13 }
   0x4   :  { %p1464_p1 = scmp.lt.u32.totalorder %s1460_s16, %s1668_s0 }
   0x6   :  { %p1466_p2 = pnand %p1464_p1, %p1461_p0 }
   0x8   :  { %1469 = shalt.err (!%p1466_p2)
}
   0x9   :  { %s1470_s21 = scalar_lea.vmem %s17_s13, 16384  ;;  %p1475_p4 = scmp.lt.s32.totalorder %s17_s13, %s17_s13 }
   0xa   :  { %p1471_p3 = scmp.ne.s32.totalorder %s17_s13, %s1470_s21  ;;  %p1476_p5 = scmp.lt.s32.totalorder %s1470_s21, %s1470_s21 }
   0xc   :  { %p1477_p6 = por %p1476_p5, %p1475_p4 }
   0xe   :  { %p1478_p7 = pnand %p1477_p6, %p1471_p3 }
  0x10   :  { %1481 = shalt.err (!%p1478_p7)
}
  0x11   :  { %s1533_s22 = smov 512   ;;  %s1534_s23 = smov 32  }
  0x12   :  { %22 = dma.hbm_to_vmem [thread:$0]  %s1668_s0, 16384, %s17_s13, [#allocation3], %s1533_s22, %s1533_s22, %s1534_s23  }
  0x13   :  { %s1535_s26 = smov [#allocation5]   ;;  %s1482_s30 = scalar_lea.hbm %s1669_s1, 8192 }
  0x14   :  { %s28_s27 = sshll.u32 %s1535_s26, 4  ;;  %p1483_p8 = scmp.ne.s32.totalorder %s1669_s1, %s1482_s30  ;;  %s29_s27 = int_to_ptr.vmem [resolvable:$true] %s28_s27 }
  0x15   :  { %p1486_p9 = scmp.lt.u32.totalorder %s1482_s30, %s1669_s1 }
  0x17   :  { %p1488_p10 = pnand %p1486_p9, %p1483_p8 }
  0x19   :  { %1491 = shalt.err (!%p1488_p10)
}
  0x1a   :  { %s1492_s8 = scalar_lea.vmem %s29_s27, 8192  ;;  %p1497_p12 = scmp.lt.s32.totalorder %s29_s27, %s29_s27 }
  0x1b   :  { %p1493_p11 = scmp.ne.s32.totalorder %s29_s27, %s1492_s8  ;;  %p1498_p13 = scmp.lt.s32.totalorder %s1492_s8, %s1492_s8 }
  0x1d   :  { %p1499_p0 = por %p1498_p13, %p1497_p12 }
  0x1f   :  { %p1500_p1 = pnand %p1499_p0, %p1493_p11 }
  0x21   :  { %1503 = shalt.err (!%p1500_p1)
}
  0x22   :  { %s1536_s0 = smov 128   ;;  %s1537_s9 = smov 8  }
  0x23   :  { %34 = dma.hbm_to_vmem [thread:$0]  %s1669_s1, 8192, %s29_s27, [#allocation6], %s1536_s0, %s1536_s0, %s1537_s9  }
  0x24   :  { %1526 = dma.done.wait [#allocation3], 16384  }
  0x25   :  { %1527 = vsyncadd [#allocation3], 4294950912 }
  0x26   :  { %1528 = dma.done.wait [#allocation6], 8192  }
  0x27   :  { %1529 = vsyncadd [#allocation6], 4294959104  ;;  %v1364_v0 = vld [vmem:[#allocation5 + $0x4] ss:$8 sps:$4 sm:$0xff]   ;;  %v1368_v2 = vld [vmem:[#allocation5] ss:$8 sps:$4 sm:$0xff]  }
  0x28   :  { %v1366_v1 = vld [vmem:[#allocation5 + $0x104] ss:$8 sps:$4 sm:$0xff]   ;;  %631 = vmatprep.subr.bf16.mxu1 %v1364_v0  ;;  %v1369_v3 = vld [vmem:[#allocation5 + $0x100] ss:$8 sps:$4 sm:$0xff]   ;;  %v1370_v4 = vld [vmem:[#allocation5 + $0x14] ss:$8 sps:$4 sm:$0xff]  }
  0x29   :  { %824 = vmatprep.subr.bf16.mxu0 %v1366_v1  ;;  %632 = vmatpush1.bf16.msra.mxu1 %v1368_v2  ;;  %v1372_v5 = vld [vmem:[#allocation5 + $0x114] ss:$8 sps:$4 sm:$0xff]   ;;  %v1374_v6 = vld [vmem:[#allocation5 + $0x10] ss:$8 sps:$4 sm:$0xff]   ;;  %v1376_v8 = vld [vmem:[#allocation5 + $0x24] ss:$8 sps:$4 sm:$0xff]  }
  0x2a   :  { %825 = vmatpush1.bf16.msra.mxu0 %v1369_v3  ;;  %633 = vmatprep.subr.bf16.mxu1 %v1370_v4  ;;  %v1375_v7 = vld [vmem:[#allocation5 + $0x110] ss:$8 sps:$4 sm:$0xff]   ;;  %v1378_v9 = vld [vmem:[#allocation5 + $0x124] ss:$8 sps:$4 sm:$0xff]   ;;  %v1380_v10 = vld [vmem:[#allocation5 + $0x20] ss:$8 sps:$4 sm:$0xff]  }
  0x2b   :  { %826 = vmatprep.subr.bf16.mxu0 %v1372_v5  ;;  %v1381_v11 = vld [vmem:[#allocation5 + $0x120] ss:$8 sps:$4 sm:$0xff]   ;;  %v1382_v12 = vld [vmem:[#allocation5 + $0x34] ss:$8 sps:$4 sm:$0xff]   ;;  %v1386_v14 = vld [vmem:[#allocation5 + $0x30] ss:$8 sps:$4 sm:$0xff]  }
  0x2c   :  { %v1384_v13 = vld [vmem:[#allocation5 + $0x134] ss:$8 sps:$4 sm:$0xff]   ;;  %v1387_v15 = vld [vmem:[#allocation5 + $0x130] ss:$8 sps:$4 sm:$0xff]   ;;  %v1388_v16 = vld [vmem:[#allocation5 + $0x44] ss:$8 sps:$4 sm:$0xff]  }
  0x2d   :  { %634 = vmatpush1.bf16.msra.mxu1 %v1374_v6  ;;  %v1390_v17 = vld [vmem:[#allocation5 + $0x144] ss:$8 sps:$4 sm:$0xff]   ;;  %v1392_v18 = vld [vmem:[#allocation5 + $0x40] ss:$8 sps:$4 sm:$0xff]   ;;  %v1394_v20 = vld [vmem:[#allocation5 + $0x54] ss:$8 sps:$4 sm:$0xff]  }
  0x2e   :  { %827 = vmatpush1.bf16.msra.mxu0 %v1375_v7  ;;  %635 = vmatprep.subr.bf16.mxu1 %v1376_v8  ;;  %v1393_v19 = vld [vmem:[#allocation5 + $0x140] ss:$8 sps:$4 sm:$0xff]   ;;  %v1396_v21 = vld [vmem:[#allocation5 + $0x154] ss:$8 sps:$4 sm:$0xff]   ;;  %v1398_v22 = vld [vmem:[#allocation5 + $0x50] ss:$8 sps:$4 sm:$0xff]  }
  0x2f   :  { %828 = vmatprep.subr.bf16.mxu0 %v1378_v9  ;;  %v1399_v23 = vld [vmem:[#allocation5 + $0x150] ss:$8 sps:$4 sm:$0xff]   ;;  %v1400_v24 = vld [vmem:[#allocation5 + $0x64] ss:$8 sps:$4 sm:$0xff]   ;;  %v1404_v26 = vld [vmem:[#allocation5 + $0x60] ss:$8 sps:$4 sm:$0xff]  }
  0x30   :  { %v1402_v25 = vld [vmem:[#allocation5 + $0x164] ss:$8 sps:$4 sm:$0xff]   ;;  %v1405_v27 = vld [vmem:[#allocation5 + $0x160] ss:$8 sps:$4 sm:$0xff]   ;;  %v1406_v28 = vld [vmem:[#allocation5 + $0x74] ss:$8 sps:$4 sm:$0xff]  }
  0x31   :  { %636 = vmatpush1.bf16.msra.mxu1 %v1380_v10  ;;  %v1408_v29 = vld [vmem:[#allocation5 + $0x174] ss:$8 sps:$4 sm:$0xff]   ;;  %v1410_v30 = vld [vmem:[#allocation5 + $0x70] ss:$8 sps:$4 sm:$0xff]   ;;  %v1412_v32 = vld [vmem:[#allocation5 + $0x84] ss:$8 sps:$4 sm:$0xff]  }
  0x32   :  { %829 = vmatpush1.bf16.msra.mxu0 %v1381_v11  ;;  %637 = vmatprep.subr.bf16.mxu1 %v1382_v12  ;;  %v1411_v31 = vld [vmem:[#allocation5 + $0x170] ss:$8 sps:$4 sm:$0xff]   ;;  %v1414_v33 = vld [vmem:[#allocation5 + $0x184] ss:$8 sps:$4 sm:$0xff]   ;;  %v1416_v34 = vld [vmem:[#allocation5 + $0x80] ss:$8 sps:$4 sm:$0xff]  }
  0x33   :  { %830 = vmatprep.subr.bf16.mxu0 %v1384_v13  ;;  %v1417_v35 = vld [vmem:[#allocation5 + $0x180] ss:$8 sps:$4 sm:$0xff]   ;;  %v1418_v36 = vld [vmem:[#allocation5 + $0x94] ss:$8 sps:$4 sm:$0xff]   ;;  %v1422_v38 = vld [vmem:[#allocation5 + $0x90] ss:$8 sps:$4 sm:$0xff]  }
  0x34   :  { %v1420_v37 = vld [vmem:[#allocation5 + $0x194] ss:$8 sps:$4 sm:$0xff]   ;;  %v1423_v39 = vld [vmem:[#allocation5 + $0x190] ss:$8 sps:$4 sm:$0xff]   ;;  %v1424_v40 = vld [vmem:[#allocation5 + $0xa4] ss:$8 sps:$4 sm:$0xff]  }
  0x35   :  { %638 = vmatpush1.bf16.msra.mxu1 %v1386_v14  ;;  %v1426_v41 = vld [vmem:[#allocation5 + $0x1a4] ss:$8 sps:$4 sm:$0xff]   ;;  %v1428_v42 = vld [vmem:[#allocation5 + $0xa0] ss:$8 sps:$4 sm:$0xff]   ;;  %v1430_v44 = vld [vmem:[#allocation5 + $0xb4] ss:$8 sps:$4 sm:$0xff]  }
  0x36   :  { %831 = vmatpush1.bf16.msra.mxu0 %v1387_v15  ;;  %639 = vmatprep.subr.bf16.mxu1 %v1388_v16  ;;  %v1429_v43 = vld [vmem:[#allocation5 + $0x1a0] ss:$8 sps:$4 sm:$0xff]   ;;  %v1432_v45 = vld [vmem:[#allocation5 + $0x1b4] ss:$8 sps:$4 sm:$0xff]   ;;  %v1434_v50 = vld [vmem:[#allocation5 + $0xb0] ss:$8 sps:$4 sm:$0xff]  }
  0x37   :  { %832 = vmatprep.subr.bf16.mxu0 %v1390_v17  ;;  %v44_v46 = vld [vmem:[#allocation2 + $0x8] sm:$0xff]  ;;  %v46_v48 = vld [vmem:[#allocation2 + $0x18] sm:$0xff]  ;;  %v43_v6 = vld [vmem:[#allocation2] sm:$0xff] }
  0x38   :  { %v48_v47 = vld [vmem:[#allocation2 + $0x28] sm:$0xff]  ;;  %v50_v49 = vld [vmem:[#allocation2 + $0x38] sm:$0xff]  ;;  %v47_v7 = vld [vmem:[#allocation2 + $0x20] sm:$0xff] }
  0x39   :  { %640 = vmatpush1.bf16.msra.mxu1 %v1392_v18  ;;  %v1435_v51 = vld [vmem:[#allocation5 + $0x1b0] ss:$8 sps:$4 sm:$0xff]   ;;  %v172_v52 = vpack.c.bf16 %v48_v47, %v44_v46  ;;  %v174_v53 = vpack.c.bf16 %v50_v49, %v46_v48  ;;  %v1436_v54 = vld [vmem:[#allocation5 + $0xc4] ss:$8 sps:$4 sm:$0xff]   ;;  %v1440_v56 = vld [vmem:[#allocation5 + $0xc0] ss:$8 sps:$4 sm:$0xff]   ;;  %v171_v14 = vpack.c.bf16 %v47_v7, %v43_v6 }
  0x3a   :  { %833 = vmatpush1.bf16.msra.mxu0 %v1393_v19  ;;  %641 = vmatprep.subr.bf16.mxu1 %v1394_v20  ;;  %v1438_v55 = vld [vmem:[#allocation5 + $0x1c4] ss:$8 sps:$4 sm:$0xff]   ;;  %v1441_v57 = vld [vmem:[#allocation5 + $0x1c0] ss:$8 sps:$4 sm:$0xff]   ;;  %v1442_v58 = vld [vmem:[#allocation5 + $0xd4] ss:$8 sps:$4 sm:$0xff]  }
  0x3b   :  { %834 = vmatprep.subr.bf16.mxu0 %v1396_v21  ;;  %663 = vmatprep.mubr.bf16.mxu1 %v172_v52  ;;  %v1444_v59 = vld [vmem:[#allocation5 + $0x1d4] ss:$8 sps:$4 sm:$0xff]   ;;  %v1446_v60 = vld [vmem:[#allocation5 + $0xd0] ss:$8 sps:$4 sm:$0xff]   ;;  %v1448_v62 = vld [vmem:[#allocation5 + $0xe4] ss:$8 sps:$4 sm:$0xff]  }
  0x3c   :  { %856 = vmatprep.mubr.bf16.mxu0 %v174_v53  ;;  %v1447_v61 = vld [vmem:[#allocation5 + $0x1d0] ss:$8 sps:$4 sm:$0xff]   ;;  %v1450_v63 = vld [vmem:[#allocation5 + $0x1e4] ss:$8 sps:$4 sm:$0xff]   ;;  %v1452_v0 = vld [vmem:[#allocation5 + $0xe0] ss:$8 sps:$4 sm:$0xff]  }
  0x3d   :  { %642 = vmatpush1.bf16.msra.mxu1 %v1398_v22  ;;  %v1453_v1 = vld [vmem:[#allocation5 + $0x1e0] ss:$8 sps:$4 sm:$0xff]   ;;  %v1454_v2 = vld [vmem:[#allocation5 + $0xf4] ss:$8 sps:$4 sm:$0xff]   ;;  %v1458_v4 = vld [vmem:[#allocation5 + $0xf0] ss:$8 sps:$4 sm:$0xff]  }
  0x3e   :  { %835 = vmatpush1.bf16.msra.mxu0 %v1399_v23  ;;  %643 = vmatprep.subr.bf16.mxu1 %v1400_v24  ;;  %v1456_v3 = vld [vmem:[#allocation5 + $0x1f4] ss:$8 sps:$4 sm:$0xff]   ;;  %v1459_v5 = vld [vmem:[#allocation5 + $0x1f0] ss:$8 sps:$4 sm:$0xff]   ;;  %v52_v10 = vld [vmem:[#allocation2 + $0x48] sm:$0xff] }
  0x3f   :  { %836 = vmatprep.subr.bf16.mxu0 %v1402_v25  ;;  %v45_v8 = vld [vmem:[#allocation2 + $0x10] sm:$0xff]  ;;  %v56_v11 = vld [vmem:[#allocation2 + $0x68] sm:$0xff]  ;;  %v54_v12 = vld [vmem:[#allocation2 + $0x58] sm:$0xff] }
  0x40   :  { %v49_v9 = vld [vmem:[#allocation2 + $0x30] sm:$0xff]  ;;  %v58_v13 = vld [vmem:[#allocation2 + $0x78] sm:$0xff]  ;;  %v176_v16 = vpack.c.bf16 %v56_v11, %v52_v10  ;;  %v51_v18 = vld [vmem:[#allocation2 + $0x40] sm:$0xff] }
  0x41   :  { %644 = vmatpush1.bf16.msra.mxu1 %v1404_v26  ;;  %v173_v15 = vpack.c.bf16 %v49_v9, %v45_v8  ;;  %v178_v17 = vpack.c.bf16 %v58_v13, %v54_v12  ;;  %v55_v19 = vld [vmem:[#allocation2 + $0x60] sm:$0xff]  ;;  %v53_v20 = vld [vmem:[#allocation2 + $0x50] sm:$0xff]  ;;  %v60_v22 = vld [vmem:[#allocation2 + $0x88] sm:$0xff] }
  0x42   :  { %837 = vmatpush1.bf16.msra.mxu0 %v1405_v27  ;;  %645 = vmatprep.subr.bf16.mxu1 %v1406_v28  ;;  %v57_v21 = vld [vmem:[#allocation2 + $0x70] sm:$0xff]  ;;  %v64_v23 = vld [vmem:[#allocation2 + $0xa8] sm:$0xff]  ;;  %v62_v24 = vld [vmem:[#allocation2 + $0x98] sm:$0xff]  ;;  %v175_v26 = vpack.c.bf16 %v55_v19, %v51_v18 }
  0x43   :  { %838 = vmatprep.subr.bf16.mxu0 %v1408_v29  ;;  %v66_v25 = vld [vmem:[#allocation2 + $0xb8] sm:$0xff]  ;;  %v177_v27 = vpack.c.bf16 %v57_v21, %v53_v20  ;;  %v180_v28 = vpack.c.bf16 %v64_v23, %v60_v22  ;;  %v76_v46 = vld [vmem:[#allocation2 + $0x108] sm:$0xff] }
  0x44   :  { %v182_v29 = vpack.c.bf16 %v66_v25, %v62_v24  ;;  %v80_v47 = vld [vmem:[#allocation2 + $0x128] sm:$0xff]  ;;  %v78_v48 = vld [vmem:[#allocation2 + $0x118] sm:$0xff] }
  0x45   :  { %646 = vmatpush1.bf16.msra.mxu1 %v1410_v30  ;;  %v59_v30 = vld [vmem:[#allocation2 + $0x80] sm:$0xff]  ;;  %v82_v49 = vld [vmem:[#allocation2 + $0x138] sm:$0xff]  ;;  %v188_v52 = vpack.c.bf16 %v80_v47, %v76_v46  ;;  %v92_v6 = vld [vmem:[#allocation2 + $0x188] sm:$0xff] }
  0x46   :  { %839 = vmatpush1.bf16.msra.mxu0 %v1411_v31  ;;  %647 = vmatprep.subr.bf16.mxu1 %v1412_v32  ;;  %v63_v31 = vld [vmem:[#allocation2 + $0xa0] sm:$0xff]  ;;  %v61_v32 = vld [vmem:[#allocation2 + $0x90] sm:$0xff]  ;;  %v190_v53 = vpack.c.bf16 %v82_v49, %v78_v48  ;;  %v96_v7 = vld [vmem:[#allocation2 + $0x1a8] sm:$0xff] }
  0x47   :  { %840 = vmatprep.subr.bf16.mxu0 %v1414_v33  ;;  %v65_v33 = vld [vmem:[#allocation2 + $0xb0] sm:$0xff]  ;;  %v94_v8 = vld [vmem:[#allocation2 + $0x198] sm:$0xff]  ;;  %v196_v12 = vpack.c.bf16 %v96_v7, %v92_v6  ;;  %v100_v18 = vld [vmem:[#allocation2 + $0x1c8] sm:$0xff] }
  0x48   :  { %v98_v9 = vld [vmem:[#allocation2 + $0x1b8] sm:$0xff]  ;;  %v104_v19 = vld [vmem:[#allocation2 + $0x1e8] sm:$0xff] }
  0x49   :  { %648 = vmatpush1.bf16.msra.mxu1 %v1416_v34  ;;  %v68_v34 = vld [vmem:[#allocation2 + $0xc8] sm:$0xff]  ;;  %v198_v13 = vpack.c.bf16 %v98_v9, %v94_v8  ;;  %v102_v20 = vld [vmem:[#allocation2 + $0x1d8] sm:$0xff]  ;;  %v200_v24 = vpack.c.bf16 %v104_v19, %v100_v18 }
  0x4a   :  { %841 = vmatpush1.bf16.msra.mxu0 %v1417_v35  ;;  %649 = vmatprep.subr.bf16.mxu1 %v1418_v36  ;;  %v72_v35 = vld [vmem:[#allocation2 + $0xe8] sm:$0xff]  ;;  %v70_v36 = vld [vmem:[#allocation2 + $0xd8] sm:$0xff] }
  0x4b   :  { %842 = vmatprep.subr.bf16.mxu0 %v1420_v37  ;;  %v74_v37 = vld [vmem:[#allocation2 + $0xf8] sm:$0xff] }
  0x4c   :  { %v106_v21 = vld [vmem:[#allocation2 + $0x1f8] sm:$0xff] }
  0x4d   :  { %650 = vmatpush1.bf16.msra.mxu1 %v1422_v38  ;;  %v179_v38 = vpack.c.bf16 %v63_v31, %v59_v30  ;;  %v202_v25 = vpack.c.bf16 %v106_v21, %v102_v20  ;;  %v108_v30 = vld [vmem:[#allocation2 + $0x208] sm:$0xff] }
  0x4e   :  { %843 = vmatpush1.bf16.msra.mxu0 %v1423_v39  ;;  %651 = vmatprep.subr.bf16.mxu1 %v1424_v40  ;;  %v181_v39 = vpack.c.bf16 %v65_v33, %v61_v32  ;;  %v184_v40 = vpack.c.bf16 %v72_v35, %v68_v34  ;;  %v112_v31 = vld [vmem:[#allocation2 + $0x228] sm:$0xff]  ;;  %v110_v32 = vld [vmem:[#allocation2 + $0x218] sm:$0xff] }
  0x4f   :  { %844 = vmatprep.subr.bf16.mxu0 %v1426_v41  ;;  %v186_v41 = vpack.c.bf16 %v74_v37, %v70_v36  ;;  %v114_v33 = vld [vmem:[#allocation2 + $0x238] sm:$0xff]  ;;  %v204_v36 = vpack.c.bf16 %v112_v31, %v108_v30 }
  0x50   :  { %v206_v37 = vpack.c.bf16 %v114_v33, %v110_v32 }
  0x51   :  { %652 = vmatpush1.bf16.msra.mxu1 %v1428_v42  ;;  %v67_v42 = vld [vmem:[#allocation2 + $0xc0] sm:$0xff] }
  0x52   :  { %845 = vmatpush1.bf16.msra.mxu0 %v1429_v43  ;;  %653 = vmatprep.subr.bf16.mxu1 %v1430_v44  ;;  %v71_v43 = vld [vmem:[#allocation2 + $0xe0] sm:$0xff]  ;;  %v69_v44 = vld [vmem:[#allocation2 + $0xd0] sm:$0xff] }
  0x53   :  { %846 = vmatprep.subr.bf16.mxu0 %v1432_v45  ;;  %v73_v45 = vld [vmem:[#allocation2 + $0xf0] sm:$0xff] }
  0x55   :  { %654 = vmatpush1.bf16.msra.mxu1 %v1434_v50  ;;  %v183_v50 = vpack.c.bf16 %v71_v43, %v67_v42  ;;  %v116_v42 = vld [vmem:[#allocation2 + $0x248] sm:$0xff] }
  0x56   :  { %847 = vmatpush1.bf16.msra.mxu0 %v1435_v51  ;;  %655 = vmatprep.subr.bf16.mxu1 %v1436_v54  ;;  %v185_v51 = vpack.c.bf16 %v73_v45, %v69_v44  ;;  %v75_v54 = vld [vmem:[#allocation2 + $0x100] sm:$0xff]  ;;  %v120_v43 = vld [vmem:[#allocation2 + $0x268] sm:$0xff]  ;;  %v118_v44 = vld [vmem:[#allocation2 + $0x258] sm:$0xff] }
  0x57   :  { %848 = vmatprep.subr.bf16.mxu0 %v1438_v55  ;;  %v79_v55 = vld [vmem:[#allocation2 + $0x120] sm:$0xff]  ;;  %v122_v45 = vld [vmem:[#allocation2 + $0x278] sm:$0xff]  ;;  %v208_v48 = vpack.c.bf16 %v120_v43, %v116_v42 }
  0x58   :  { %v210_v49 = vpack.c.bf16 %v122_v45, %v118_v44 }
  0x59   :  { %656 = vmatpush1.bf16.msra.mxu1 %v1440_v56  ;;  %v77_v56 = vld [vmem:[#allocation2 + $0x110] sm:$0xff] }
  0x5a   :  { %849 = vmatpush1.bf16.msra.mxu0 %v1441_v57  ;;  %657 = vmatprep.subr.bf16.mxu1 %v1442_v58  ;;  %v81_v57 = vld [vmem:[#allocation2 + $0x130] sm:$0xff]  ;;  %v84_v58 = vld [vmem:[#allocation2 + $0x148] sm:$0xff] }
  0x5b   :  { %850 = vmatprep.subr.bf16.mxu0 %v1444_v59  ;;  %v88_v59 = vld [vmem:[#allocation2 + $0x168] sm:$0xff] }
  0x5d   :  { %658 = vmatpush1.bf16.msra.mxu1 %v1446_v60  ;;  %v86_v60 = vld [vmem:[#allocation2 + $0x158] sm:$0xff] }
  0x5e   :  { %851 = vmatpush1.bf16.msra.mxu0 %v1447_v61  ;;  %659 = vmatprep.subr.bf16.mxu1 %v1448_v62  ;;  %v90_v61 = vld [vmem:[#allocation2 + $0x178] sm:$0xff]  ;;  %v187_v62 = vpack.c.bf16 %v79_v55, %v75_v54  ;;  %v124_v54 = vld [vmem:[#allocation2 + $0x288] sm:$0xff] }
  0x5f   :  { %852 = vmatprep.subr.bf16.mxu0 %v1450_v63  ;;  %v189_v63 = vpack.c.bf16 %v81_v57, %v77_v56  ;;  %v128_v55 = vld [vmem:[#allocation2 + $0x2a8] sm:$0xff]  ;;  %v126_v56 = vld [vmem:[#allocation2 + $0x298] sm:$0xff] }
  0x60   :  { %v130_v57 = vld [vmem:[#allocation2 + $0x2b8] sm:$0xff] }
  0x61   :  { %660 = vmatpush1.bf16.msra.mxu1 %v1452_v0  ;;  %v192_v0 = vpack.c.bf16 %v88_v59, %v84_v58 }
  0x62   :  { %853 = vmatpush1.bf16.msra.mxu0 %v1453_v1  ;;  %661 = vmatprep.subr.bf16.mxu1 %v1454_v2  ;;  %v194_v1 = vpack.c.bf16 %v90_v61, %v86_v60  ;;  %v83_v2 = vld [vmem:[#allocation2 + $0x140] sm:$0xff]  ;;  %v212_v60 = vpack.c.bf16 %v128_v55, %v124_v54  ;;  %v214_v61 = vpack.c.bf16 %v130_v57, %v126_v56 }
  0x63   :  { %854 = vmatprep.subr.bf16.mxu0 %v1456_v3  ;;  %v87_v3 = vld [vmem:[#allocation2 + $0x160] sm:$0xff] }
  0x64   :  { %v191_v10 = vpack.c.bf16 %v87_v3, %v83_v2  ;;  %v132_v2 = vld [vmem:[#allocation2 + $0x2c8] sm:$0xff] }
  0x65   :  { %662 = vmatpush1.bf16.msra.mxu1 %v1458_v4  ;;  %v85_v4 = vld [vmem:[#allocation2 + $0x150] sm:$0xff]  ;;  %v136_v3 = vld [vmem:[#allocation2 + $0x2e8] sm:$0xff] }
  0x66   :  { %855 = vmatpush1.bf16.msra.mxu0 %v1459_v5  ;;  %v89_v5 = vld [vmem:[#allocation2 + $0x170] sm:$0xff]  ;;  %v216_v8 = vpack.c.bf16 %v136_v3, %v132_v2  ;;  %v299_v3 = vld [vmem:[%s1670_s2] sm:$0x3]  ;;  %s1538_s2 = smov [#allocation7]  }
  0x67   :  { %v193_v11 = vpack.c.bf16 %v89_v5, %v85_v4  ;;  %v134_v4 = vld [vmem:[#allocation2 + $0x2d8] sm:$0xff]  ;;  %s1150_s13 = sshll.u32 %s1538_s2, 4  ;;  %s1151_s13 = int_to_ptr.vmem [resolvable:$true] %s1150_s13 }
  0x68   :  { %664 = vmatmul.mubr.bf16.vlgmr.msra.gmra.mrb[0].mxu1 %v171_v14  ;;  %v91_v14 = vld [vmem:[#allocation2 + $0x180] sm:$0xff]  ;;  %v138_v5 = vld [vmem:[#allocation2 + $0x2f8] sm:$0xff]  ;;  %s1504_s14 = scalar_lea.vmem %s1151_s13, 8192  ;;  %p1509_p3 = scmp.lt.s32.totalorder %s1151_s13, %s1151_s13 }
  0x69   :  { %857 = vmatmul.mubr.bf16.vlgmr.msra.gmra.mrb[0].mxu0 %v173_v15  ;;  %673 = vmatprep.mubr.bf16.mxu1 %v176_v16  ;;  %v95_v15 = vld [vmem:[#allocation2 + $0x1a0] sm:$0xff]  ;;  %v93_v16 = vld [vmem:[#allocation2 + $0x190] sm:$0xff]  ;;  %v218_v9 = vpack.c.bf16 %v138_v5, %v134_v4  ;;  %p1505_p2 = scmp.ne.s32.totalorder %s1151_s13, %s1504_s14  ;;  %p1510_p4 = scmp.lt.s32.totalorder %s1504_s14, %s1504_s14 }
  0x6a   :  { %866 = vmatprep.mubr.bf16.mxu0 %v178_v17  ;;  %v97_v17 = vld [vmem:[#allocation2 + $0x1b0] sm:$0xff]  ;;  %v195_v22 = vpack.c.bf16 %v95_v15, %v91_v14  ;;  %v140_v14 = vld [vmem:[#allocation2 + $0x308] sm:$0xff] }
  0x6b   :  { %v197_v23 = vpack.c.bf16 %v97_v17, %v93_v16  ;;  %v144_v15 = vld [vmem:[#allocation2 + $0x328] sm:$0xff]  ;;  %v142_v16 = vld [vmem:[#allocation2 + $0x318] sm:$0xff]  ;;  %p1511_p5 = por %p1510_p4, %p1509_p3 }
  0x6c   :  { %v146_v17 = vld [vmem:[#allocation2 + $0x338] sm:$0xff]  ;;  %v220_v20 = vpack.c.bf16 %v144_v15, %v140_v14 }
  0x6d   :  { %v222_v21 = vpack.c.bf16 %v146_v17, %v142_v16  ;;  %p1512_p6 = pnand %p1511_p5, %p1505_p2 }
  0x70   :  { %674 = vmatmul.mubr.bf16.gmra.mrb[4].mxu1 %v175_v26  ;;  %v99_v26 = vld [vmem:[#allocation2 + $0x1c0] sm:$0xff] }
  0x71   :  { %867 = vmatmul.mubr.bf16.gmra.mrb[4].mxu0 %v177_v27  ;;  %683 = vmatprep.mubr.bf16.mxu1 %v180_v28  ;;  %v103_v27 = vld [vmem:[#allocation2 + $0x1e0] sm:$0xff]  ;;  %v101_v28 = vld [vmem:[#allocation2 + $0x1d0] sm:$0xff] }
  0x72   :  { %876 = vmatprep.mubr.bf16.mxu0 %v182_v29  ;;  %v105_v29 = vld [vmem:[#allocation2 + $0x1f0] sm:$0xff]  ;;  %v199_v34 = vpack.c.bf16 %v103_v27, %v99_v26  ;;  %v148_v26 = vld [vmem:[#allocation2 + $0x348] sm:$0xff] }
  0x73   :  { %v201_v35 = vpack.c.bf16 %v105_v29, %v101_v28  ;;  %v152_v27 = vld [vmem:[#allocation2 + $0x368] sm:$0xff]  ;;  %v150_v28 = vld [vmem:[#allocation2 + $0x358] sm:$0xff] }
  0x74   :  { %v154_v29 = vld [vmem:[#allocation2 + $0x378] sm:$0xff]  ;;  %v224_v32 = vpack.c.bf16 %v152_v27, %v148_v26 }
  0x75   :  { %v226_v33 = vpack.c.bf16 %v154_v29, %v150_v28 }
  0x78   :  { %684 = vmatmul.mubr.bf16.gmra.mrb[8].mxu1 %v179_v38  ;;  %v107_v38 = vld [vmem:[#allocation2 + $0x200] sm:$0xff] }
  0x79   :  { %877 = vmatmul.mubr.bf16.gmra.mrb[8].mxu0 %v181_v39  ;;  %693 = vmatprep.mubr.bf16.mxu1 %v184_v40  ;;  %v111_v39 = vld [vmem:[#allocation2 + $0x220] sm:$0xff]  ;;  %v109_v40 = vld [vmem:[#allocation2 + $0x210] sm:$0xff] }
  0x7a   :  { %886 = vmatprep.mubr.bf16.mxu0 %v186_v41  ;;  %v113_v41 = vld [vmem:[#allocation2 + $0x230] sm:$0xff]  ;;  %v203_v46 = vpack.c.bf16 %v111_v39, %v107_v38  ;;  %v156_v38 = vld [vmem:[#allocation2 + $0x388] sm:$0xff] }
  0x7b   :  { %v205_v47 = vpack.c.bf16 %v113_v41, %v109_v40  ;;  %v160_v39 = vld [vmem:[#allocation2 + $0x3a8] sm:$0xff]  ;;  %v158_v40 = vld [vmem:[#allocation2 + $0x398] sm:$0xff] }
  0x7c   :  { %v162_v41 = vld [vmem:[#allocation2 + $0x3b8] sm:$0xff]  ;;  %v228_v44 = vpack.c.bf16 %v160_v39, %v156_v38 }
  0x7d   :  { %v230_v45 = vpack.c.bf16 %v162_v41, %v158_v40 }
  0x80   :  { %694 = vmatmul.mubr.bf16.gmra.mrb[12].mxu1 %v183_v50  ;;  %v115_v50 = vld [vmem:[#allocation2 + $0x240] sm:$0xff] }
  0x81   :  { %887 = vmatmul.mubr.bf16.gmra.mrb[12].mxu0 %v185_v51  ;;  %703 = vmatprep.mubr.bf16.mxu1 %v188_v52  ;;  %v119_v51 = vld [vmem:[#allocation2 + $0x260] sm:$0xff]  ;;  %v117_v52 = vld [vmem:[#allocation2 + $0x250] sm:$0xff] }
  0x82   :  { %896 = vmatprep.mubr.bf16.mxu0 %v190_v53  ;;  %v121_v53 = vld [vmem:[#allocation2 + $0x270] sm:$0xff]  ;;  %v207_v58 = vpack.c.bf16 %v119_v51, %v115_v50  ;;  %v164_v50 = vld [vmem:[#allocation2 + $0x3c8] sm:$0xff] }
  0x83   :  { %v209_v59 = vpack.c.bf16 %v121_v53, %v117_v52  ;;  %v168_v51 = vld [vmem:[#allocation2 + $0x3e8] sm:$0xff]  ;;  %v166_v52 = vld [vmem:[#allocation2 + $0x3d8] sm:$0xff] }
  0x84   :  { %v170_v53 = vld [vmem:[#allocation2 + $0x3f8] sm:$0xff]  ;;  %v232_v56 = vpack.c.bf16 %v168_v51, %v164_v50 }
  0x85   :  { %v234_v57 = vpack.c.bf16 %v170_v53, %v166_v52 }
  0x88   :  { %704 = vmatmul.mubr.bf16.gmra.mrb[16].mxu1 %v187_v62  ;;  %v123_v62 = vld [vmem:[#allocation2 + $0x280] sm:$0xff] }
  0x89   :  { %897 = vmatmul.mubr.bf16.gmra.mrb[16].mxu0 %v189_v63  ;;  %713 = vmatprep.mubr.bf16.mxu1 %v192_v0  ;;  %v127_v63 = vld [vmem:[#allocation2 + $0x2a0] sm:$0xff]  ;;  %v125_v0 = vld [vmem:[#allocation2 + $0x290] sm:$0xff] }
  0x8a   :  { %906 = vmatprep.mubr.bf16.mxu0 %v194_v1  ;;  %v129_v1 = vld [vmem:[#allocation2 + $0x2b0] sm:$0xff]  ;;  %v211_v6 = vpack.c.bf16 %v127_v63, %v123_v62 }
  0x8b   :  { %v213_v7 = vpack.c.bf16 %v129_v1, %v125_v0  ;;  %v301_v0 = vlaneseq }
  0x8d   :  { %v302_v1 = vshrl.u32 %v301_v0, 7 }
  0x8f   :  { %v303_v2 = vsub.s32 0, %v302_v1  ;;  %v307_v4 = vsub.s32 1, %v302_v1 }
  0x90   :  { %714 = vmatmul.mubr.bf16.gmra.mrb[20].mxu1 %v191_v10  ;;  %v131_v10 = vld [vmem:[#allocation2 + $0x2c0] sm:$0xff] }
  0x91   :  { %907 = vmatmul.mubr.bf16.gmra.mrb[20].mxu0 %v193_v11  ;;  %723 = vmatprep.mubr.bf16.mxu1 %v196_v12  ;;  %v135_v11 = vld [vmem:[#allocation2 + $0x2e0] sm:$0xff]  ;;  %v133_v12 = vld [vmem:[#allocation2 + $0x2d0] sm:$0xff]  ;;  %v1588_v5 = vrot.slane %v299_v3, %v303_v2 }
  0x92   :  { %916 = vmatprep.mubr.bf16.mxu0 %v198_v13  ;;  %v137_v13 = vld [vmem:[#allocation2 + $0x2f0] sm:$0xff]  ;;  %v215_v18 = vpack.c.bf16 %v135_v11, %v131_v10 }
  0x93   :  { %v217_v19 = vpack.c.bf16 %v137_v13, %v133_v12 }
  0x98   :  { %724 = vmatmul.mubr.bf16.gmra.mrb[24].mxu1 %v195_v22  ;;  %v139_v22 = vld [vmem:[#allocation2 + $0x300] sm:$0xff] }
  0x99   :  { %917 = vmatmul.mubr.bf16.gmra.mrb[24].mxu0 %v197_v23  ;;  %733 = vmatprep.mubr.bf16.mxu1 %v200_v24  ;;  %v143_v23 = vld [vmem:[#allocation2 + $0x320] sm:$0xff]  ;;  %v141_v24 = vld [vmem:[#allocation2 + $0x310] sm:$0xff] }
  0x9a   :  { %926 = vmatprep.mubr.bf16.mxu0 %v202_v25  ;;  %v145_v25 = vld [vmem:[#allocation2 + $0x330] sm:$0xff]  ;;  %v219_v30 = vpack.c.bf16 %v143_v23, %v139_v22 }
  0x9b   :  { %v221_v31 = vpack.c.bf16 %v145_v25, %v141_v24 }
  0xa0   :  { %734 = vmatmul.mubr.bf16.gmra.mrb[28].mxu1 %v199_v34  ;;  %v147_v34 = vld [vmem:[#allocation2 + $0x340] sm:$0xff] }
  0xa1   :  { %927 = vmatmul.mubr.bf16.gmra.mrb[28].mxu0 %v201_v35  ;;  %743 = vmatprep.mubr.bf16.mxu1 %v204_v36  ;;  %v151_v35 = vld [vmem:[#allocation2 + $0x360] sm:$0xff]  ;;  %v149_v36 = vld [vmem:[#allocation2 + $0x350] sm:$0xff] }
  0xa2   :  { %936 = vmatprep.mubr.bf16.mxu0 %v206_v37  ;;  %v153_v37 = vld [vmem:[#allocation2 + $0x370] sm:$0xff]  ;;  %v223_v42 = vpack.c.bf16 %v151_v35, %v147_v34 }
  0xa3   :  { %v225_v43 = vpack.c.bf16 %v153_v37, %v149_v36 }
  0xa8   :  { %744 = vmatmul.mubr.bf16.gmra.mrb[32].mxu1 %v203_v46  ;;  %v155_v46 = vld [vmem:[#allocation2 + $0x380] sm:$0xff] }
  0xa9   :  { %937 = vmatmul.mubr.bf16.gmra.mrb[32].mxu0 %v205_v47  ;;  %753 = vmatprep.mubr.bf16.mxu1 %v208_v48  ;;  %v159_v47 = vld [vmem:[#allocation2 + $0x3a0] sm:$0xff]  ;;  %v157_v48 = vld [vmem:[#allocation2 + $0x390] sm:$0xff] }
  0xaa   :  { %946 = vmatprep.mubr.bf16.mxu0 %v210_v49  ;;  %v161_v49 = vld [vmem:[#allocation2 + $0x3b0] sm:$0xff]  ;;  %v227_v54 = vpack.c.bf16 %v159_v47, %v155_v46 }
  0xab   :  { %v229_v55 = vpack.c.bf16 %v161_v49, %v157_v48 }
  0xb0   :  { %754 = vmatmul.mubr.bf16.gmra.mrb[36].mxu1 %v207_v58  ;;  %v163_v58 = vld [vmem:[#allocation2 + $0x3c0] sm:$0xff] }
  0xb1   :  { %947 = vmatmul.mubr.bf16.gmra.mrb[36].mxu0 %v209_v59  ;;  %763 = vmatprep.mubr.bf16.mxu1 %v212_v60  ;;  %v167_v59 = vld [vmem:[#allocation2 + $0x3e0] sm:$0xff]  ;;  %v165_v60 = vld [vmem:[#allocation2 + $0x3d0] sm:$0xff] }
  0xb2   :  { %956 = vmatprep.mubr.bf16.mxu0 %v214_v61  ;;  %v169_v61 = vld [vmem:[#allocation2 + $0x3f0] sm:$0xff]  ;;  %v231_v62 = vpack.c.bf16 %v167_v59, %v163_v58 }
  0xb3   :  { %v233_v63 = vpack.c.bf16 %v169_v61, %v165_v60 }
  0xb8   :  { %764 = vmatmul.mubr.bf16.gmra.mrb[40].mxu1 %v211_v6  ;;  %v1590_v6 = vrot.slane %v299_v3, %v307_v4 }
  0xb9   :  { %957 = vmatmul.mubr.bf16.gmra.mrb[40].mxu0 %v213_v7  ;;  %773 = vmatprep.mubr.bf16.mxu1 %v216_v8 }
  0xba   :  { %966 = vmatprep.mubr.bf16.mxu0 %v218_v9 }
  0xc0   :  { %774 = vmatmul.mubr.bf16.gmra.mrb[44].mxu1 %v215_v18 }
  0xc1   :  { %967 = vmatmul.mubr.bf16.gmra.mrb[44].mxu0 %v217_v19  ;;  %783 = vmatprep.mubr.bf16.mxu1 %v220_v20 }
  0xc2   :  { %976 = vmatprep.mubr.bf16.mxu0 %v222_v21 }
  0xc8   :  { %784 = vmatmul.mubr.bf16.gmra.mrb[48].mxu1 %v219_v30 }
  0xc9   :  { %977 = vmatmul.mubr.bf16.gmra.mrb[48].mxu0 %v221_v31  ;;  %793 = vmatprep.mubr.bf16.mxu1 %v224_v32 }
  0xca   :  { %986 = vmatprep.mubr.bf16.mxu0 %v226_v33 }
  0xd0   :  { %794 = vmatmul.mubr.bf16.gmra.mrb[52].mxu1 %v223_v42 }
  0xd1   :  { %987 = vmatmul.mubr.bf16.gmra.mrb[52].mxu0 %v225_v43  ;;  %803 = vmatprep.mubr.bf16.mxu1 %v228_v44 }
  0xd2   :  { %996 = vmatprep.mubr.bf16.mxu0 %v230_v45 }
  0xd8   :  { %804 = vmatmul.mubr.bf16.gmra.mrb[56].mxu1 %v227_v54 }
  0xd9   :  { %997 = vmatmul.mubr.bf16.gmra.mrb[56].mxu0 %v229_v55  ;;  %813 = vmatprep.mubr.bf16.mxu1 %v232_v56 }
  0xda   :  { %1006 = vmatprep.mubr.bf16.mxu0 %v234_v57 }
  0xe0   :  { %814 = vmatmul.mubr.bf16.gmra.mrb[60].mxu1 %v231_v62 }
  0xe1   :  { %1007 = vmatmul.mubr.bf16.gmra.mrb[60].mxu0 %v233_v63 }
 0x13b   :  { %v665_v7 = vpop.f32.mrb[0].mxu1 }
 0x13c   :  { %v858_v8 = vpop.f32.mrb[0].mxu0  ;;  %v666_v9 = vadd.f32 %v665_v7, %v1588_v5  ;;  %v667_v10 = vpop.f32.mrb[1].mxu1 }
 0x13d   :  { %v860_v11 = vpop.f32.mrb[1].mxu0  ;;  %v668_v12 = vadd.f32 %v667_v10, %v1590_v6  ;;  %v669_v13 = vpop.f32.mrb[2].mxu1 }
 0x13e   :  { %v862_v14 = vpop.f32.mrb[2].mxu0  ;;  %v859_v15 = vadd.f32 %v858_v8, %v666_v9  ;;  %v670_v16 = vadd.f32 %v669_v13, %v1588_v5  ;;  %v671_v17 = vpop.f32.mrb[3].mxu1 }
 0x13f   :  { %v864_v18 = vpop.f32.mrb[3].mxu0  ;;  %v861_v19 = vadd.f32 %v860_v11, %v668_v12  ;;  %v672_v20 = vadd.f32 %v671_v17, %v1590_v6 }
 0x140   :  { %v1017_v21 = vmax.f32 %v859_v15, 0.0  ;;  %v863_v22 = vadd.f32 %v862_v14, %v670_v16 }
 0x141   :  { %v1018_v23 = vmax.f32 %v861_v19, 0.0  ;;  %v865_v24 = vadd.f32 %v864_v18, %v672_v20 }
 0x142   :  { %1081 = vst [vmem:[#allocation7] sm:$0xff] %v1017_v21  ;;  %v1019_v25 = vmax.f32 %v863_v22, 0.0 }
 0x143   :  { %1082 = vst [vmem:[#allocation7 + $0x8] sm:$0xff] %v1018_v23  ;;  %v1020_v26 = vmax.f32 %v865_v24, 0.0  ;;  %v675_v27 = vpop.f32.mrb[4].mxu1 }
 0x144   :  { %v868_v28 = vpop.f32.mrb[4].mxu0  ;;  %1083 = vst [vmem:[#allocation7 + $0x10] sm:$0xff] %v1019_v25  ;;  %v676_v29 = vadd.f32 %v675_v27, %v1588_v5  ;;  %v677_v30 = vpop.f32.mrb[5].mxu1 }
 0x145   :  { %v870_v31 = vpop.f32.mrb[5].mxu0  ;;  %1084 = vst [vmem:[#allocation7 + $0x18] sm:$0xff] %v1020_v26  ;;  %v678_v32 = vadd.f32 %v677_v30, %v1590_v6  ;;  %v679_v33 = vpop.f32.mrb[6].mxu1 }
 0x146   :  { %v872_v34 = vpop.f32.mrb[6].mxu0  ;;  %v869_v35 = vadd.f32 %v868_v28, %v676_v29  ;;  %v680_v36 = vadd.f32 %v679_v33, %v1588_v5  ;;  %v681_v37 = vpop.f32.mrb[7].mxu1 }
 0x147   :  { %v874_v38 = vpop.f32.mrb[7].mxu0  ;;  %v871_v39 = vadd.f32 %v870_v31, %v678_v32  ;;  %v682_v40 = vadd.f32 %v681_v37, %v1590_v6 }
 0x148   :  { %v1021_v41 = vmax.f32 %v869_v35, 0.0  ;;  %v873_v42 = vadd.f32 %v872_v34, %v680_v36 }
 0x149   :  { %v1022_v43 = vmax.f32 %v871_v39, 0.0  ;;  %v875_v44 = vadd.f32 %v874_v38, %v682_v40 }
 0x14a   :  { %1085 = vst [vmem:[#allocation7 + $0x20] sm:$0xff] %v1021_v41  ;;  %v1023_v45 = vmax.f32 %v873_v42, 0.0 }
 0x14b   :  { %1086 = vst [vmem:[#allocation7 + $0x28] sm:$0xff] %v1022_v43  ;;  %v1024_v46 = vmax.f32 %v875_v44, 0.0  ;;  %v685_v47 = vpop.f32.mrb[8].mxu1 }
 0x14c   :  { %v878_v48 = vpop.f32.mrb[8].mxu0  ;;  %1087 = vst [vmem:[#allocation7 + $0x30] sm:$0xff] %v1023_v45  ;;  %v686_v49 = vadd.f32 %v685_v47, %v1588_v5  ;;  %v687_v50 = vpop.f32.mrb[9].mxu1 }
 0x14d   :  { %v880_v51 = vpop.f32.mrb[9].mxu0  ;;  %1088 = vst [vmem:[#allocation7 + $0x38] sm:$0xff] %v1024_v46  ;;  %v688_v52 = vadd.f32 %v687_v50, %v1590_v6  ;;  %v689_v53 = vpop.f32.mrb[10].mxu1 }
 0x14e   :  { %v882_v54 = vpop.f32.mrb[10].mxu0  ;;  %v879_v55 = vadd.f32 %v878_v48, %v686_v49  ;;  %v690_v56 = vadd.f32 %v689_v53, %v1588_v5  ;;  %v691_v57 = vpop.f32.mrb[11].mxu1 }
 0x14f   :  { %v884_v58 = vpop.f32.mrb[11].mxu0  ;;  %v881_v59 = vadd.f32 %v880_v51, %v688_v52  ;;  %v692_v60 = vadd.f32 %v691_v57, %v1590_v6 }
 0x150   :  { %v1025_v61 = vmax.f32 %v879_v55, 0.0  ;;  %v883_v62 = vadd.f32 %v882_v54, %v690_v56 }
 0x151   :  { %v1026_v63 = vmax.f32 %v881_v59, 0.0  ;;  %v885_v0 = vadd.f32 %v884_v58, %v692_v60 }
 0x152   :  { %1089 = vst [vmem:[#allocation7 + $0x40] sm:$0xff] %v1025_v61  ;;  %v1027_v1 = vmax.f32 %v883_v62, 0.0 }
 0x153   :  { %1090 = vst [vmem:[#allocation7 + $0x48] sm:$0xff] %v1026_v63  ;;  %v1028_v2 = vmax.f32 %v885_v0, 0.0  ;;  %v695_v3 = vpop.f32.mrb[12].mxu1 }
 0x154   :  { %v888_v4 = vpop.f32.mrb[12].mxu0  ;;  %1091 = vst [vmem:[#allocation7 + $0x50] sm:$0xff] %v1027_v1  ;;  %v696_v7 = vadd.f32 %v695_v3, %v1588_v5  ;;  %v697_v8 = vpop.f32.mrb[13].mxu1 }
 0x155   :  { %v890_v9 = vpop.f32.mrb[13].mxu0  ;;  %1092 = vst [vmem:[#allocation7 + $0x58] sm:$0xff] %v1028_v2  ;;  %v698_v10 = vadd.f32 %v697_v8, %v1590_v6  ;;  %v699_v11 = vpop.f32.mrb[14].mxu1 }
 0x156   :  { %v892_v12 = vpop.f32.mrb[14].mxu0  ;;  %v889_v13 = vadd.f32 %v888_v4, %v696_v7  ;;  %v700_v14 = vadd.f32 %v699_v11, %v1588_v5  ;;  %v701_v15 = vpop.f32.mrb[15].mxu1 }
 0x157   :  { %v894_v16 = vpop.f32.mrb[15].mxu0  ;;  %v891_v17 = vadd.f32 %v890_v9, %v698_v10  ;;  %v702_v18 = vadd.f32 %v701_v15, %v1590_v6 }
 0x158   :  { %v1029_v19 = vmax.f32 %v889_v13, 0.0  ;;  %v893_v20 = vadd.f32 %v892_v12, %v700_v14 }
 0x159   :  { %v1030_v21 = vmax.f32 %v891_v17, 0.0  ;;  %v895_v22 = vadd.f32 %v894_v16, %v702_v18 }
 0x15a   :  { %1093 = vst [vmem:[#allocation7 + $0x60] sm:$0xff] %v1029_v19  ;;  %v1031_v23 = vmax.f32 %v893_v20, 0.0 }
 0x15b   :  { %1094 = vst [vmem:[#allocation7 + $0x68] sm:$0xff] %v1030_v21  ;;  %v1032_v24 = vmax.f32 %v895_v22, 0.0  ;;  %v705_v25 = vpop.f32.mrb[16].mxu1 }
 0x15c   :  { %v898_v26 = vpop.f32.mrb[16].mxu0  ;;  %1095 = vst [vmem:[#allocation7 + $0x70] sm:$0xff] %v1031_v23  ;;  %v706_v27 = vadd.f32 %v705_v25, %v1588_v5  ;;  %v707_v28 = vpop.f32.mrb[17].mxu1 }
 0x15d   :  { %v900_v29 = vpop.f32.mrb[17].mxu0  ;;  %1096 = vst [vmem:[#allocation7 + $0x78] sm:$0xff] %v1032_v24  ;;  %v708_v30 = vadd.f32 %v707_v28, %v1590_v6  ;;  %v709_v31 = vpop.f32.mrb[18].mxu1 }
 0x15e   :  { %v902_v32 = vpop.f32.mrb[18].mxu0  ;;  %v899_v33 = vadd.f32 %v898_v26, %v706_v27  ;;  %v710_v34 = vadd.f32 %v709_v31, %v1588_v5  ;;  %v711_v35 = vpop.f32.mrb[19].mxu1 }
 0x15f   :  { %v904_v36 = vpop.f32.mrb[19].mxu0  ;;  %v901_v37 = vadd.f32 %v900_v29, %v708_v30  ;;  %v712_v38 = vadd.f32 %v711_v35, %v1590_v6 }
 0x160   :  { %v1033_v39 = vmax.f32 %v899_v33, 0.0  ;;  %v903_v40 = vadd.f32 %v902_v32, %v710_v34 }
 0x161   :  { %v1034_v41 = vmax.f32 %v901_v37, 0.0  ;;  %v905_v42 = vadd.f32 %v904_v36, %v712_v38 }
 0x162   :  { %1097 = vst [vmem:[#allocation7 + $0x80] sm:$0xff] %v1033_v39  ;;  %v1035_v43 = vmax.f32 %v903_v40, 0.0 }
 0x163   :  { %1098 = vst [vmem:[#allocation7 + $0x88] sm:$0xff] %v1034_v41  ;;  %v1036_v44 = vmax.f32 %v905_v42, 0.0  ;;  %v715_v45 = vpop.f32.mrb[20].mxu1 }
 0x164   :  { %v908_v46 = vpop.f32.mrb[20].mxu0  ;;  %1099 = vst [vmem:[#allocation7 + $0x90] sm:$0xff] %v1035_v43  ;;  %v716_v47 = vadd.f32 %v715_v45, %v1588_v5  ;;  %v717_v48 = vpop.f32.mrb[21].mxu1 }
 0x165   :  { %v910_v49 = vpop.f32.mrb[21].mxu0  ;;  %1100 = vst [vmem:[#allocation7 + $0x98] sm:$0xff] %v1036_v44  ;;  %v718_v50 = vadd.f32 %v717_v48, %v1590_v6  ;;  %v719_v51 = vpop.f32.mrb[22].mxu1 }
 0x166   :  { %v912_v52 = vpop.f32.mrb[22].mxu0  ;;  %v909_v53 = vadd.f32 %v908_v46, %v716_v47  ;;  %v720_v54 = vadd.f32 %v719_v51, %v1588_v5  ;;  %v721_v55 = vpop.f32.mrb[23].mxu1 }
 0x167   :  { %v914_v56 = vpop.f32.mrb[23].mxu0  ;;  %v911_v57 = vadd.f32 %v910_v49, %v718_v50  ;;  %v722_v58 = vadd.f32 %v721_v55, %v1590_v6 }
 0x168   :  { %v1037_v59 = vmax.f32 %v909_v53, 0.0  ;;  %v913_v60 = vadd.f32 %v912_v52, %v720_v54 }
 0x169   :  { %v1038_v61 = vmax.f32 %v911_v57, 0.0  ;;  %v915_v62 = vadd.f32 %v914_v56, %v722_v58 }
 0x16a   :  { %1101 = vst [vmem:[#allocation7 + $0xa0] sm:$0xff] %v1037_v59  ;;  %v1039_v63 = vmax.f32 %v913_v60, 0.0 }
 0x16b   :  { %1102 = vst [vmem:[#allocation7 + $0xa8] sm:$0xff] %v1038_v61  ;;  %v1040_v0 = vmax.f32 %v915_v62, 0.0  ;;  %v725_v1 = vpop.f32.mrb[24].mxu1 }
 0x16c   :  { %v918_v2 = vpop.f32.mrb[24].mxu0  ;;  %1103 = vst [vmem:[#allocation7 + $0xb0] sm:$0xff] %v1039_v63  ;;  %v726_v3 = vadd.f32 %v725_v1, %v1588_v5  ;;  %v727_v4 = vpop.f32.mrb[25].mxu1 }
 0x16d   :  { %v920_v7 = vpop.f32.mrb[25].mxu0  ;;  %1104 = vst [vmem:[#allocation7 + $0xb8] sm:$0xff] %v1040_v0  ;;  %v728_v8 = vadd.f32 %v727_v4, %v1590_v6  ;;  %v729_v9 = vpop.f32.mrb[26].mxu1 }
 0x16e   :  { %v922_v10 = vpop.f32.mrb[26].mxu0  ;;  %v919_v11 = vadd.f32 %v918_v2, %v726_v3  ;;  %v730_v12 = vadd.f32 %v729_v9, %v1588_v5  ;;  %v731_v13 = vpop.f32.mrb[27].mxu1 }
 0x16f   :  { %v924_v14 = vpop.f32.mrb[27].mxu0  ;;  %v921_v15 = vadd.f32 %v920_v7, %v728_v8  ;;  %v732_v16 = vadd.f32 %v731_v13, %v1590_v6 }
 0x170   :  { %v1041_v17 = vmax.f32 %v919_v11, 0.0  ;;  %v923_v18 = vadd.f32 %v922_v10, %v730_v12 }
 0x171   :  { %v1042_v19 = vmax.f32 %v921_v15, 0.0  ;;  %v925_v20 = vadd.f32 %v924_v14, %v732_v16 }
 0x172   :  { %1105 = vst [vmem:[#allocation7 + $0xc0] sm:$0xff] %v1041_v17  ;;  %v1043_v21 = vmax.f32 %v923_v18, 0.0 }
 0x173   :  { %1106 = vst [vmem:[#allocation7 + $0xc8] sm:$0xff] %v1042_v19  ;;  %v1044_v22 = vmax.f32 %v925_v20, 0.0  ;;  %v735_v23 = vpop.f32.mrb[28].mxu1 }
 0x174   :  { %v928_v24 = vpop.f32.mrb[28].mxu0  ;;  %1107 = vst [vmem:[#allocation7 + $0xd0] sm:$0xff] %v1043_v21  ;;  %v736_v25 = vadd.f32 %v735_v23, %v1588_v5  ;;  %v737_v26 = vpop.f32.mrb[29].mxu1 }
 0x175   :  { %v930_v27 = vpop.f32.mrb[29].mxu0  ;;  %1108 = vst [vmem:[#allocation7 + $0xd8] sm:$0xff] %v1044_v22  ;;  %v738_v28 = vadd.f32 %v737_v26, %v1590_v6  ;;  %v739_v29 = vpop.f32.mrb[30].mxu1 }
 0x176   :  { %v932_v30 = vpop.f32.mrb[30].mxu0  ;;  %v929_v31 = vadd.f32 %v928_v24, %v736_v25  ;;  %v740_v32 = vadd.f32 %v739_v29, %v1588_v5  ;;  %v741_v33 = vpop.f32.mrb[31].mxu1 }
 0x177   :  { %v934_v34 = vpop.f32.mrb[31].mxu0  ;;  %v931_v35 = vadd.f32 %v930_v27, %v738_v28  ;;  %v742_v36 = vadd.f32 %v741_v33, %v1590_v6 }
 0x178   :  { %v1045_v37 = vmax.f32 %v929_v31, 0.0  ;;  %v933_v38 = vadd.f32 %v932_v30, %v740_v32 }
 0x179   :  { %v1046_v39 = vmax.f32 %v931_v35, 0.0  ;;  %v935_v40 = vadd.f32 %v934_v34, %v742_v36 }
 0x17a   :  { %1109 = vst [vmem:[#allocation7 + $0xe0] sm:$0xff] %v1045_v37  ;;  %v1047_v41 = vmax.f32 %v933_v38, 0.0 }
 0x17b   :  { %1110 = vst [vmem:[#allocation7 + $0xe8] sm:$0xff] %v1046_v39  ;;  %v1048_v42 = vmax.f32 %v935_v40, 0.0  ;;  %v745_v43 = vpop.f32.mrb[32].mxu1 }
 0x17c   :  { %v938_v44 = vpop.f32.mrb[32].mxu0  ;;  %1111 = vst [vmem:[#allocation7 + $0xf0] sm:$0xff] %v1047_v41  ;;  %v746_v45 = vadd.f32 %v745_v43, %v1588_v5  ;;  %v747_v46 = vpop.f32.mrb[33].mxu1 }
 0x17d   :  { %v940_v47 = vpop.f32.mrb[33].mxu0  ;;  %1112 = vst [vmem:[#allocation7 + $0xf8] sm:$0xff] %v1048_v42  ;;  %v748_v48 = vadd.f32 %v747_v46, %v1590_v6  ;;  %v749_v49 = vpop.f32.mrb[34].mxu1 }
 0x17e   :  { %v942_v50 = vpop.f32.mrb[34].mxu0  ;;  %v939_v51 = vadd.f32 %v938_v44, %v746_v45  ;;  %v750_v52 = vadd.f32 %v749_v49, %v1588_v5  ;;  %v751_v53 = vpop.f32.mrb[35].mxu1 }
 0x17f   :  { %v944_v54 = vpop.f32.mrb[35].mxu0  ;;  %v941_v55 = vadd.f32 %v940_v47, %v748_v48  ;;  %v752_v56 = vadd.f32 %v751_v53, %v1590_v6 }
 0x180   :  { %v1049_v57 = vmax.f32 %v939_v51, 0.0  ;;  %v943_v58 = vadd.f32 %v942_v50, %v750_v52 }
 0x181   :  { %v1050_v59 = vmax.f32 %v941_v55, 0.0  ;;  %v945_v60 = vadd.f32 %v944_v54, %v752_v56 }
 0x182   :  { %1113 = vst [vmem:[#allocation7 + $0x100] sm:$0xff] %v1049_v57  ;;  %v1051_v61 = vmax.f32 %v943_v58, 0.0 }
 0x183   :  { %1114 = vst [vmem:[#allocation7 + $0x108] sm:$0xff] %v1050_v59  ;;  %v1052_v62 = vmax.f32 %v945_v60, 0.0  ;;  %v755_v63 = vpop.f32.mrb[36].mxu1 }
 0x184   :  { %v948_v0 = vpop.f32.mrb[36].mxu0  ;;  %1115 = vst [vmem:[#allocation7 + $0x110] sm:$0xff] %v1051_v61  ;;  %v756_v1 = vadd.f32 %v755_v63, %v1588_v5  ;;  %v757_v2 = vpop.f32.mrb[37].mxu1 }
 0x185   :  { %v950_v3 = vpop.f32.mrb[37].mxu0  ;;  %1116 = vst [vmem:[#allocation7 + $0x118] sm:$0xff] %v1052_v62  ;;  %v758_v4 = vadd.f32 %v757_v2, %v1590_v6  ;;  %v759_v7 = vpop.f32.mrb[38].mxu1 }
 0x186   :  { %v952_v8 = vpop.f32.mrb[38].mxu0  ;;  %v949_v9 = vadd.f32 %v948_v0, %v756_v1  ;;  %v760_v10 = vadd.f32 %v759_v7, %v1588_v5  ;;  %v761_v11 = vpop.f32.mrb[39].mxu1 }
 0x187   :  { %v954_v12 = vpop.f32.mrb[39].mxu0  ;;  %v951_v13 = vadd.f32 %v950_v3, %v758_v4  ;;  %v762_v14 = vadd.f32 %v761_v11, %v1590_v6 }
 0x188   :  { %v1053_v15 = vmax.f32 %v949_v9, 0.0  ;;  %v953_v16 = vadd.f32 %v952_v8, %v760_v10 }
 0x189   :  { %v1054_v17 = vmax.f32 %v951_v13, 0.0  ;;  %v955_v18 = vadd.f32 %v954_v12, %v762_v14 }
 0x18a   :  { %1117 = vst [vmem:[#allocation7 + $0x120] sm:$0xff] %v1053_v15  ;;  %v1055_v19 = vmax.f32 %v953_v16, 0.0 }
 0x18b   :  { %1118 = vst [vmem:[#allocation7 + $0x128] sm:$0xff] %v1054_v17  ;;  %v1056_v20 = vmax.f32 %v955_v18, 0.0  ;;  %v765_v21 = vpop.f32.mrb[40].mxu1 }
 0x18c   :  { %v958_v22 = vpop.f32.mrb[40].mxu0  ;;  %1119 = vst [vmem:[#allocation7 + $0x130] sm:$0xff] %v1055_v19  ;;  %v766_v23 = vadd.f32 %v765_v21, %v1588_v5  ;;  %v767_v24 = vpop.f32.mrb[41].mxu1 }
 0x18d   :  { %v960_v25 = vpop.f32.mrb[41].mxu0  ;;  %1120 = vst [vmem:[#allocation7 + $0x138] sm:$0xff] %v1056_v20  ;;  %v768_v26 = vadd.f32 %v767_v24, %v1590_v6  ;;  %v769_v27 = vpop.f32.mrb[42].mxu1 }
 0x18e   :  { %v962_v28 = vpop.f32.mrb[42].mxu0  ;;  %v959_v29 = vadd.f32 %v958_v22, %v766_v23  ;;  %v770_v30 = vadd.f32 %v769_v27, %v1588_v5  ;;  %v771_v31 = vpop.f32.mrb[43].mxu1 }
 0x18f   :  { %v964_v32 = vpop.f32.mrb[43].mxu0  ;;  %v961_v33 = vadd.f32 %v960_v25, %v768_v26  ;;  %v772_v34 = vadd.f32 %v771_v31, %v1590_v6 }
 0x190   :  { %v1057_v35 = vmax.f32 %v959_v29, 0.0  ;;  %v963_v36 = vadd.f32 %v962_v28, %v770_v30 }
 0x191   :  { %v1058_v37 = vmax.f32 %v961_v33, 0.0  ;;  %v965_v38 = vadd.f32 %v964_v32, %v772_v34 }
 0x192   :  { %1121 = vst [vmem:[#allocation7 + $0x140] sm:$0xff] %v1057_v35  ;;  %v1059_v39 = vmax.f32 %v963_v36, 0.0 }
 0x193   :  { %1122 = vst [vmem:[#allocation7 + $0x148] sm:$0xff] %v1058_v37  ;;  %v1060_v40 = vmax.f32 %v965_v38, 0.0  ;;  %v775_v41 = vpop.f32.mrb[44].mxu1 }
 0x194   :  { %v968_v42 = vpop.f32.mrb[44].mxu0  ;;  %1123 = vst [vmem:[#allocation7 + $0x150] sm:$0xff] %v1059_v39  ;;  %v776_v43 = vadd.f32 %v775_v41, %v1588_v5  ;;  %v777_v44 = vpop.f32.mrb[45].mxu1 }
 0x195   :  { %v970_v45 = vpop.f32.mrb[45].mxu0  ;;  %1124 = vst [vmem:[#allocation7 + $0x158] sm:$0xff] %v1060_v40  ;;  %v778_v46 = vadd.f32 %v777_v44, %v1590_v6  ;;  %v779_v47 = vpop.f32.mrb[46].mxu1 }
 0x196   :  { %v972_v48 = vpop.f32.mrb[46].mxu0  ;;  %v969_v49 = vadd.f32 %v968_v42, %v776_v43  ;;  %v780_v50 = vadd.f32 %v779_v47, %v1588_v5  ;;  %v781_v51 = vpop.f32.mrb[47].mxu1 }
 0x197   :  { %v974_v52 = vpop.f32.mrb[47].mxu0  ;;  %v971_v53 = vadd.f32 %v970_v45, %v778_v46  ;;  %v782_v54 = vadd.f32 %v781_v51, %v1590_v6 }
 0x198   :  { %v1061_v55 = vmax.f32 %v969_v49, 0.0  ;;  %v973_v56 = vadd.f32 %v972_v48, %v780_v50 }
 0x199   :  { %v1062_v57 = vmax.f32 %v971_v53, 0.0  ;;  %v975_v58 = vadd.f32 %v974_v52, %v782_v54 }
 0x19a   :  { %1125 = vst [vmem:[#allocation7 + $0x160] sm:$0xff] %v1061_v55  ;;  %v1063_v59 = vmax.f32 %v973_v56, 0.0 }
 0x19b   :  { %1126 = vst [vmem:[#allocation7 + $0x168] sm:$0xff] %v1062_v57  ;;  %v1064_v60 = vmax.f32 %v975_v58, 0.0  ;;  %v785_v61 = vpop.f32.mrb[48].mxu1 }
 0x19c   :  { %v978_v62 = vpop.f32.mrb[48].mxu0  ;;  %1127 = vst [vmem:[#allocation7 + $0x170] sm:$0xff] %v1063_v59  ;;  %v786_v63 = vadd.f32 %v785_v61, %v1588_v5  ;;  %v787_v0 = vpop.f32.mrb[49].mxu1 }
 0x19d   :  { %v980_v1 = vpop.f32.mrb[49].mxu0  ;;  %1128 = vst [vmem:[#allocation7 + $0x178] sm:$0xff] %v1064_v60  ;;  %v788_v2 = vadd.f32 %v787_v0, %v1590_v6  ;;  %v789_v3 = vpop.f32.mrb[50].mxu1 }
 0x19e   :  { %v982_v4 = vpop.f32.mrb[50].mxu0  ;;  %v979_v7 = vadd.f32 %v978_v62, %v786_v63  ;;  %v790_v8 = vadd.f32 %v789_v3, %v1588_v5  ;;  %v791_v9 = vpop.f32.mrb[51].mxu1 }
 0x19f   :  { %v984_v10 = vpop.f32.mrb[51].mxu0  ;;  %v981_v11 = vadd.f32 %v980_v1, %v788_v2  ;;  %v792_v12 = vadd.f32 %v791_v9, %v1590_v6 }
 0x1a0   :  { %v1065_v13 = vmax.f32 %v979_v7, 0.0  ;;  %v983_v14 = vadd.f32 %v982_v4, %v790_v8 }
 0x1a1   :  { %v1066_v15 = vmax.f32 %v981_v11, 0.0  ;;  %v985_v16 = vadd.f32 %v984_v10, %v792_v12 }
 0x1a2   :  { %1129 = vst [vmem:[#allocation7 + $0x180] sm:$0xff] %v1065_v13  ;;  %v1067_v17 = vmax.f32 %v983_v14, 0.0 }
 0x1a3   :  { %1130 = vst [vmem:[#allocation7 + $0x188] sm:$0xff] %v1066_v15  ;;  %v1068_v18 = vmax.f32 %v985_v16, 0.0  ;;  %v795_v19 = vpop.f32.mrb[52].mxu1 }
 0x1a4   :  { %v988_v20 = vpop.f32.mrb[52].mxu0  ;;  %1131 = vst [vmem:[#allocation7 + $0x190] sm:$0xff] %v1067_v17  ;;  %v796_v21 = vadd.f32 %v795_v19, %v1588_v5  ;;  %v797_v22 = vpop.f32.mrb[53].mxu1 }
 0x1a5   :  { %v990_v23 = vpop.f32.mrb[53].mxu0  ;;  %1132 = vst [vmem:[#allocation7 + $0x198] sm:$0xff] %v1068_v18  ;;  %v798_v24 = vadd.f32 %v797_v22, %v1590_v6  ;;  %v799_v25 = vpop.f32.mrb[54].mxu1 }
 0x1a6   :  { %v992_v26 = vpop.f32.mrb[54].mxu0  ;;  %v989_v27 = vadd.f32 %v988_v20, %v796_v21  ;;  %v800_v28 = vadd.f32 %v799_v25, %v1588_v5  ;;  %v801_v29 = vpop.f32.mrb[55].mxu1 }
 0x1a7   :  { %v994_v30 = vpop.f32.mrb[55].mxu0  ;;  %v991_v31 = vadd.f32 %v990_v23, %v798_v24  ;;  %v802_v32 = vadd.f32 %v801_v29, %v1590_v6 }
 0x1a8   :  { %v1069_v33 = vmax.f32 %v989_v27, 0.0  ;;  %v993_v34 = vadd.f32 %v992_v26, %v800_v28 }
 0x1a9   :  { %v1070_v35 = vmax.f32 %v991_v31, 0.0  ;;  %v995_v36 = vadd.f32 %v994_v30, %v802_v32 }
 0x1aa   :  { %1133 = vst [vmem:[#allocation7 + $0x1a0] sm:$0xff] %v1069_v33  ;;  %v1071_v37 = vmax.f32 %v993_v34, 0.0 }
 0x1ab   :  { %1134 = vst [vmem:[#allocation7 + $0x1a8] sm:$0xff] %v1070_v35  ;;  %v1072_v38 = vmax.f32 %v995_v36, 0.0  ;;  %v805_v39 = vpop.f32.mrb[56].mxu1 }
 0x1ac   :  { %v998_v40 = vpop.f32.mrb[56].mxu0  ;;  %1135 = vst [vmem:[#allocation7 + $0x1b0] sm:$0xff] %v1071_v37  ;;  %v806_v41 = vadd.f32 %v805_v39, %v1588_v5  ;;  %v807_v42 = vpop.f32.mrb[57].mxu1 }
 0x1ad   :  { %v1000_v43 = vpop.f32.mrb[57].mxu0  ;;  %1136 = vst [vmem:[#allocation7 + $0x1b8] sm:$0xff] %v1072_v38  ;;  %v808_v44 = vadd.f32 %v807_v42, %v1590_v6  ;;  %v809_v45 = vpop.f32.mrb[58].mxu1 }
 0x1ae   :  { %v1002_v46 = vpop.f32.mrb[58].mxu0  ;;  %v999_v47 = vadd.f32 %v998_v40, %v806_v41  ;;  %v810_v48 = vadd.f32 %v809_v45, %v1588_v5  ;;  %v811_v49 = vpop.f32.mrb[59].mxu1 }
 0x1af   :  { %v1004_v50 = vpop.f32.mrb[59].mxu0  ;;  %v1001_v51 = vadd.f32 %v1000_v43, %v808_v44  ;;  %v812_v52 = vadd.f32 %v811_v49, %v1590_v6 }
 0x1b0   :  { %v1073_v53 = vmax.f32 %v999_v47, 0.0  ;;  %v1003_v54 = vadd.f32 %v1002_v46, %v810_v48 }
 0x1b1   :  { %v1074_v55 = vmax.f32 %v1001_v51, 0.0  ;;  %v1005_v56 = vadd.f32 %v1004_v50, %v812_v52 }
 0x1b2   :  { %1137 = vst [vmem:[#allocation7 + $0x1c0] sm:$0xff] %v1073_v53  ;;  %v1075_v57 = vmax.f32 %v1003_v54, 0.0 }
 0x1b3   :  { %1138 = vst [vmem:[#allocation7 + $0x1c8] sm:$0xff] %v1074_v55  ;;  %v1076_v58 = vmax.f32 %v1005_v56, 0.0  ;;  %v815_v59 = vpop.f32.mrb[60].mxu1 }
 0x1b4   :  { %v1008_v60 = vpop.f32.mrb[60].mxu0  ;;  %1139 = vst [vmem:[#allocation7 + $0x1d0] sm:$0xff] %v1075_v57  ;;  %v816_v61 = vadd.f32 %v815_v59, %v1588_v5  ;;  %v817_v62 = vpop.f32.mrb[61].mxu1 }
 0x1b5   :  { %v1010_v63 = vpop.f32.mrb[61].mxu0  ;;  %1140 = vst [vmem:[#allocation7 + $0x1d8] sm:$0xff] %v1076_v58  ;;  %v818_v0 = vadd.f32 %v817_v62, %v1590_v6  ;;  %v819_v1 = vpop.f32.mrb[62].mxu1 }
 0x1b6   :  { %v1012_v2 = vpop.f32.mrb[62].mxu0  ;;  %v1009_v3 = vadd.f32 %v1008_v60, %v816_v61  ;;  %v820_v4 = vadd.f32 %v819_v1, %v1588_v5  ;;  %v821_v7 = vpop.f32.mrb[63].mxu1 }
 0x1b7   :  { %v1014_v8 = vpop.f32.mrb[63].mxu0  ;;  %v1011_v9 = vadd.f32 %v1010_v63, %v818_v0  ;;  %v822_v10 = vadd.f32 %v821_v7, %v1590_v6 }
 0x1b8   :  { %v1077_v11 = vmax.f32 %v1009_v3, 0.0  ;;  %v1013_v12 = vadd.f32 %v1012_v2, %v820_v4 }
 0x1b9   :  { %v1078_v13 = vmax.f32 %v1011_v9, 0.0  ;;  %v1015_v14 = vadd.f32 %v1014_v8, %v822_v10 }
 0x1ba   :  { %1141 = vst [vmem:[#allocation7 + $0x1e0] sm:$0xff] %v1077_v11  ;;  %v1079_v15 = vmax.f32 %v1013_v12, 0.0 }
 0x1bb   :  { %1142 = vst [vmem:[#allocation7 + $0x1e8] sm:$0xff] %v1078_v13  ;;  %v1080_v16 = vmax.f32 %v1015_v14, 0.0 }
 0x1bc   :  { %1143 = vst [vmem:[#allocation7 + $0x1f0] sm:$0xff] %v1079_v15 }
 0x1bd   :  { %1144 = vst [vmem:[#allocation7 + $0x1f8] sm:$0xff] %v1080_v16 }
 0x1be   :  { %1515 = shalt.err (!%p1512_p6)
}
 0x1bf   :  { %s1516_s17 = scalar_lea.hbm %s1671_s3, 8192 }
 0x1c0   :  { %p1517_p7 = scmp.ne.s32.totalorder %s1671_s3, %s1516_s17  ;;  %p1520_p8 = scmp.lt.u32.totalorder %s1516_s17, %s1671_s3 }
 0x1c2   :  { %p1522_p9 = pnand %p1520_p8, %p1517_p7 }
 0x1c4   :  { %1525 = shalt.err (!%p1522_p9)
}
 0x1c5   :  { %s1539_s22 = smov 256   ;;  %s1540_s23 = smov 16  }
 0x1c6   :  { %1156 = dma.vmem_to_hbm [thread:$0]  %s1151_s13, 8192, %s1671_s3, [#allocation4], %s1539_s22, %s1539_s22, %s1540_s23  }
 0x1c7   :  { %1530 = dma.done.wait [#allocation4], 8192  }
 0x1c8   :  { %1531 = vsyncadd [#allocation4], 4294959104 }
 0x1c9   :  { %1160 = vsyncpa [#allocation3], 1 }
 0x1ca   :  { %1161 = vsyncpa [#allocation6], 1 }
 0x1cb   :  { %1162 = vsyncpa [#allocation4], 1 }

</bundles_post_ra>
